<compile_context>
chip_gen: v5e
topology: v5e:2x2
jax: 0.10.0
libtpu: 0.0.40
codegen_flags: <defaults>
</compile_context>

<pallas_src>
import jax
import jax.numpy as jnp
from jax.experimental import pallas as pl
from jax.experimental.pallas import tpu as pltpu


def _round_up(x: int, m: int) -> int:
    return ((x + m - 1) // m) * m


def highway_kernel(x_ref, wgt_ref, bg_ref, o_ref):
    """One (TN, E) row-tile of the Highway forward (gate branch only)."""
    x = x_ref[...]                                             # [TN, E], native dtype
    # MXU matmul in bf16 (canonical [M,K]x[K,N]; weight pre-transposed in the
    # wrapper), f32 accumulation + f32 bias.
    gate_lin = jnp.dot(
        x.astype(jnp.bfloat16), wgt_ref[...],
        preferred_element_type=jnp.float32,
    ) + bg_ref[...]                                            # [TN, E] f32
    gate = jax.nn.sigmoid(gate_lin)                            # EUP, f32
    x_f32 = x.astype(jnp.float32)
    # Exactly as written in the PyTorch module (mathematically == x).
    y = gate * x_f32 + (1.0 - gate) * x_f32
    o_ref[...] = y.astype(o_ref.dtype)


def _vmem_budget_bytes() -> int:
    """~75% of physical VMEM, capped at 96 MiB (v5e/v6e: 96 MiB, v7x: 48 MiB)."""
    try:
        phys = pltpu.get_tpu_info().vmem_capacity_bytes
    except Exception:
        phys = 64 * 1024 * 1024          # conservative (v7x-sized) fallback
    return min(int(phys * 3 // 4), 96 * 1024 * 1024)


def highway_forward(x, w_proj, b_proj, w_gate, b_gate, *,
                    block_rows=512, exploit_identity=False):
    """Highway forward.

    x       : [N, E]
    w_proj  : [E, E]  torch Linear layout (dead in the reference forward)
    b_proj  : [E]     (dead)
    w_gate  : [E, E]  torch Linear layout [out_features, in_features]
    b_gate  : [E]
    """
    # conv_out_proj never reaches the output in the reference forward -> drop it.
    del w_proj, b_proj

    if exploit_identity:
        # gate*x + (1-gate)*x == x: skip all compute and HBM traffic when
        # op-level rounding parity with the PyTorch graph is not required.
        return x

    N, E = x.shape
    itemsize = jnp.dtype(x.dtype).itemsize
    sub = max(8, 32 // itemsize)                 # 8 (f32), 16 (bf16), 32 (int8/fp8)
    e_pad = _round_up(E, 128)                    # lane-dense feature axis

    # ---- VMEM budget -> row tile size ---------------------------------------
    vmem_budget = _vmem_budget_bytes()
    weight_vmem = e_pad * e_pad * 2              # bf16 weight, single-buffered
    bias_vmem = 8 * e_pad * 4                    # (1,E) f32 padded to (8,128) tiles
    headroom = 2 * 1024 * 1024
    per_row_vmem = e_pad * itemsize * 4          # 2x input + 2x output buffers
    # NOTE: for E large enough that the bf16 (E,E) weight alone exceeds the
    # budget (E >= ~4k on v7x), add a second grid axis over E_out with weight
    # blocks (E, tile_out) instead of a fully resident weight. Not needed here.
    tn_cap = (vmem_budget - weight_vmem - bias_vmem - headroom) // per_row_vmem
    tn_cap = max(sub, (int(tn_cap) // sub) * sub)

    tn = min(block_rows, tn_cap, _round_up(N, sub))
    # v7x megacore: make sure the "parallel" row axis has >= 2 blocks when
    # N allows it (otherwise one TensorCore sits idle).
    if N > sub:
        tn = min(tn, _round_up((N + 1) // 2, sub))
    tn = max(sub, (tn // sub) * sub)             # dtype-correct sublane multiple

    # Avoid the jnp.pad HBM copy of x: prefer a slightly smaller tile that
    # divides N exactly; only pad as a last resort (or for tiny/awkward N).
    if N % tn != 0:
        t, best = tn, None
        while t >= sub:
            if N % t == 0:
                best = t
                break
            t -= sub
        if best is not None and best * 2 >= tn:
            tn = best
    n_pad = _round_up(N, tn)
    needs_pad = (n_pad != N) or (e_pad != E)

    # ---- one-time operand prep ----------------------------------------------
    x_in = jnp.pad(x, ((0, n_pad - N), (0, e_pad - E))) if needs_pad else x
    # torch [out,in] -> [in,out] (canonical MXU feed) + bf16 cast, once.
    wgt = jnp.asarray(w_gate).T.astype(jnp.bfloat16)
    bg = jnp.asarray(b_gate, jnp.float32).reshape(1, E)
    if e_pad != E:
        wgt = jnp.pad(wgt, ((0, e_pad - E), (0, e_pad - E)))
        bg = jnp.pad(bg, ((0, 0), (0, e_pad - E)))

    out = pl.pallas_call(
        highway_kernel,
        out_shape=jax.ShapeDtypeStruct((n_pad, e_pad), x.dtype),
        grid=(n_pad // tn,),
        in_specs=[
            # x tile, streamed over rows (double-buffered by the pipeline).
            pl.BlockSpec((tn, e_pad), lambda i: (i, 0)),
            # Grid-invariant gate weight / bias: VMEM-resident, single-buffered.
            pl.BlockSpec((e_pad, e_pad), lambda i: (0, 0),
                         pipeline_mode=pl.Buffered(1)),
            pl.BlockSpec((1, e_pad), lambda i: (0, 0),
                         pipeline_mode=pl.Buffered(1)),
        ],
        out_specs=pl.BlockSpec((tn, e_pad), lambda i: (i, 0)),
        compiler_params=pltpu.CompilerParams(
            dimension_semantics=("parallel",),   # independent row tiles
            vmem_limit_bytes=int(vmem_budget),
        ),
    )(x_in, wgt, bg)

    return out[:N, :E] if needs_pad else out


if __name__ == "__main__":
    # Small but lane-dense demo shapes: embed_dim multiple of 128.
    embed_dim = 128
    batch = 64

    key = jax.random.PRNGKey(0)
    kx, kwp, kbp, kwg, kbg = jax.random.split(key, 5)

    x = jax.random.normal(kx, (batch, embed_dim), dtype=jnp.float32)
    # torch nn.Linear weight shape is [out_features, in_features]
    w_proj = jax.random.normal(kwp, (embed_dim, embed_dim), dtype=jnp.float32) * 0.1
    b_proj = jax.random.normal(kbp, (embed_dim,), dtype=jnp.float32) * 0.1
    w_gate = jax.random.normal(kwg, (embed_dim, embed_dim), dtype=jnp.float32) * 0.1
    b_gate = jax.random.normal(kbg, (embed_dim,), dtype=jnp.float32) * 0.1

    out = highway_forward(x, w_proj, b_proj, w_gate, b_gate)
    out = jax.block_until_ready(out)

    # Pure-JAX reference, mirroring the PyTorch forward exactly (f32).
    x_proj_ref = jnp.maximum(x @ w_proj.T + b_proj, 0.0)   # dead, as in the module
    x_gate_ref = jax.nn.sigmoid(x @ w_gate.T + b_gate)
    ref = x_gate_ref * x + (1.0 - x_gate_ref) * x

    assert out.shape == x.shape and out.dtype == x.dtype
    assert jnp.allclose(out, ref, atol=1e-5, rtol=1e-5)
    print("KERNEL_OK")
</pallas_src>

<mosaic_0001>
module attributes {stable_mosaic.version = 11 : i64} {
  func.func @highway_kernel(%arg0: i32, %arg1: memref<32x128xf32, #tpu.memory_space<vmem>>, %arg2: memref<128x128xbf16, #tpu.memory_space<vmem>>, %arg3: memref<1x128xf32, #tpu.memory_space<vmem>>, %arg4: memref<32x128xf32, #tpu.memory_space<vmem>>) attributes {dimension_semantics = [#tpu.dimension_semantics<parallel>], iteration_bounds = array<i64: 2>, scalar_prefetch = 0 : i64, scratch_operands = 0 : i64, tpu.core_type = #tpu.core_type<tc>, window_params = [{transform_indices = @transform_0, window_bounds = array<i64: 32, 128>}, {pipeline_mode = #tpu.pipeline_mode<synchronous>, transform_indices = @transform_1, window_bounds = array<i64: 128, 128>}, {pipeline_mode = #tpu.pipeline_mode<synchronous>, transform_indices = @transform_2, window_bounds = array<i64: 1, 128>}, {transform_indices = @transform_3, window_bounds = array<i64: 32, 128>}]} {
    %c0 = arith.constant 0 : index
    %c0_0 = arith.constant 0 : index
    %0 = vector.load %arg1[%c0, %c0_0] : memref<32x128xf32, #tpu.memory_space<vmem>>, vector<32x128xf32>
    %1 = arith.truncf %0 : vector<32x128xf32> to vector<32x128xbf16>
    %c0_1 = arith.constant 0 : index
    %c0_2 = arith.constant 0 : index
    %2 = vector.load %arg2[%c0_1, %c0_2] : memref<128x128xbf16, #tpu.memory_space<vmem>>, vector<128x128xbf16>
    %cst = arith.constant dense<0.000000e+00> : vector<32x128xf32>
    %3 = tpu.matmul %1, %2, %cst {dimension_numbers = #tpu.dot_dimension_numbers<[1], [0], [0], [1], [0, 0, 1, 1], [], []>} : vector<32x128xbf16>, vector<128x128xbf16>, vector<32x128xf32> -> vector<32x128xf32>
    %c0_3 = arith.constant 0 : index
    %c0_4 = arith.constant 0 : index
    %4 = vector.load %arg3[%c0_3, %c0_4] : memref<1x128xf32, #tpu.memory_space<vmem>>, vector<1x128xf32>
    %5 = vector.broadcast %4 : vector<1x128xf32> to vector<32x128xf32>
    %6 = arith.addf %3, %5 : vector<32x128xf32>
    %7 = arith.negf %6 : vector<32x128xf32>
    %8 = math.exp %7 : vector<32x128xf32>
    %cst_5 = arith.constant 1.000000e+00 : f32
    %9 = vector.broadcast %cst_5 : f32 to vector<32x128xf32>
    %10 = arith.addf %9, %8 : vector<32x128xf32>
    %11 = arith.divf %9, %10 : vector<32x128xf32>
    %12 = arith.mulf %11, %0 : vector<32x128xf32>
    %cst_6 = arith.constant 1.000000e+00 : f32
    %13 = vector.broadcast %cst_6 : f32 to vector<32x128xf32>
    %14 = arith.subf %13, %11 : vector<32x128xf32>
    %15 = arith.mulf %14, %0 : vector<32x128xf32>
    %16 = arith.addf %12, %15 : vector<32x128xf32>
    %c0_7 = arith.constant 0 : index
    %c0_8 = arith.constant 0 : index
    %17 = vector.load %arg4[%c0_7, %c0_8] : memref<32x128xf32, #tpu.memory_space<vmem>>, vector<32x128xf32>
    tpu.vector_store %arg4[%c0_7, %c0_8], %16 {strides = array<i32>} : memref<32x128xf32, #tpu.memory_space<vmem>>, vector<32x128xf32>,
    return
  }
  func.func @transform_0(%arg0: i32) -> (i32, i32) {
    %c0_i32 = arith.constant 0 : i32
    %c0_i32_0 = arith.constant 0 : i32
    return %arg0, %c0_i32 : i32, i32
  }
  func.func @transform_1(%arg0: i32) -> (i32, i32) {
    %c0_i32 = arith.constant 0 : i32
    %c0_i32_0 = arith.constant 0 : i32
    %c0_i32_1 = arith.constant 0 : i32
    return %c0_i32, %c0_i32_0 : i32, i32
  }
  func.func @transform_2(%arg0: i32) -> (i32, i32) {
    %c0_i32 = arith.constant 0 : i32
    %c0_i32_0 = arith.constant 0 : i32
    %c0_i32_1 = arith.constant 0 : i32
    return %c0_i32, %c0_i32_0 : i32, i32
  }
  func.func @transform_3(%arg0: i32) -> (i32, i32) {
    %c0_i32 = arith.constant 0 : i32
    %c0_i32_0 = arith.constant 0 : i32
    return %arg0, %c0_i32 : i32, i32
  }
}

</mosaic_0001>

<bundles_post_ra>
// kernel: tpu_custom_call.1
= control target key start
LH: loop header
LB: loop body
LE: loop exit
PB: predicated region body
PF: predicated region fallthrough
CT: control target
= control target key end

     0   :  { %8 = vsyncpa [#allocation3], 0  ;;  %s981_s0 = inlined_call_operand.hbm [shape: f32[64,128], index: 0, kind: input, shape index: {}]   ;;  %s982_s1 = inlined_call_operand.hbm [shape: bf16[128,128], index: 1, kind: input, shape index: {}]   ;;  %s983_s2 = inlined_call_operand.vmem [shape: f32[1,128], index: 2, kind: input, shape index: {}]   ;;  %s984_s3 = inlined_call_operand.hbm [shape: f32[64,128], index: 3, kind: output, shape index: {}]  }
   0x1   :  { %10 = vsyncpa [#allocation3 + $0x1], 0 }
   0x2   :  { %11 = vsyncpa [#allocation6], 0 }
   0x3   :  { %12 = vsyncpa [#allocation4], 0 }
   0x4   :  { %14 = vsyncpa [#allocation4 + $0x1], 0  ;;  %s807_s12 = smov 0   ;;  %s809_s13 = smov 0  }
   0x5   :  { %s811_s14 = smov 0   ;;  %s813_s15 = smov 0  }
   0x6 LB: > { %s828_s16 = sadd.s32 4294967295, %s778_s15   ;;  %s498_s17 = sadd.s32 4294967294, %s778_s15   ;;  %s778_s15 = sphi %s813_s15, %s994_s15   ;;  %s774_s14 = sphi %s811_s14, %s993_s14   ;;  %s770_s13 = sphi %s809_s13, %s992_s13   ;;  %s766_s12 = sphi %s807_s12, %s991_s12  }
   0x7   : > { %p40_p0 = scmp.ne.s32.totalorder %s770_s13, %s766_s12  ;;  %p41_p1 = scmp.eq.s32.totalorder %s828_s16, 0 }
   0x8   : > { %p106_p2 = scmp.eq.s32.totalorder %s828_s16, 1  ;;  %p112_p3 = scmp.eq.s32.totalorder %s498_s17, 1 }
   0x9   : > { %p837_p4 = por %p41_p1, %p40_p0  ;;  %p499_p5 = scmp.ge.s32.totalorder %s778_s15, 1 }
   0xa   : > { %p842_p6 = por %p112_p3, %p40_p0  ;;  %p119_p7 = scmp.lt.s32.totalorder %s778_s15, 3 }
   0xb   : > { %s130_s22 = sshll.u32 %s982_s1, 4  ;;  %s780_s24 = smov [#allocation5]   ;;  %s131_s22 = int_to_ptr.hbm [resolvable:$true] %s130_s22 }
   0xc   : > { %p850_p8 = pnand %p499_p5, %p119_p7  ;;  %s132_s25 = sshll.u32 %s780_s24, 4  ;;  %s133_s25 = int_to_ptr.vmem [resolvable:$true] %s132_s25 }
   0xd   : > { %s860_s26 = sadd.s32 1, %s778_s15   ;;  %s781_s27 = smov 64  }
   0xe   : > { %p576_p9 = pneg %p850_p8  ;;  %s782_s28 = smov 4  }
   0xf   : > { %s24_s29 = ssub.s32 %s778_s15, %s860_s26  ;;  %s27_s30 = sadd.s32 1, %s774_s14 }
  0x10   : > { %p577_p10 = pnand %p576_p9, %p41_p1  ;;  %p25_p12 = scmp.eq.s32.totalorder %s24_s29, 0 }
  0x11   : > { %p34_p13 = scmp.ne.s32.totalorder %s774_s14, %s770_s13  ;;  %p35_p0 = scmp.eq.s32.totalorder %s778_s15, 0 }
  0x12   : > { %579 = dma.hbm_to_vmem [thread:$0]  (!%p577_p10), %s131_s22, 1024, %s133_s25, [#allocation6], %s781_s27, %s781_s27, %s782_s28  }
  0x13   : > { %p589_p3 = scmp.lt.s32.totalorder %s778_s15, 2  ;;  %p36_p5 = por %p35_p0, %p34_p13 }
  0x14   : > { %s870_s4 = scalar_select %p25_p12, %s774_s14, %s27_s30  }
  0x15   : > { %p874_p7 = por %p106_p2, %p34_p13  ;;  %s149_s6 = sand.u32 1, %s774_s14  }
  0x16   : > { %s550_s7 = sshll.u32 %s778_s15, 5  ;;  %s502_s8 = sshll.u32 %s149_s6, 5 }
  0x17   : > { %s158_s11 = scalar_lea.hbm %s981_s0, %s550_s7  ;;  %s153_s20 = scalar_lea.vmem [#allocation2], %s502_s8 }
  0x18   : > { %s159_s17 = sshll.u32 %s158_s11, 4  ;;  %s161_s21 = sshll.u32 %s153_s20, 4  ;;  %s160_s17 = int_to_ptr.hbm [resolvable:$true] %s159_s17  ;;  %s162_s21 = int_to_ptr.vmem [resolvable:$true] %s161_s21 }
  0x19   : > { %p885_p9 = pnand %p589_p3, %p36_p5  ;;  %s150_s24 = scalar_lea.sflag [#allocation3], %s149_s6 }
  0x1a   : > { %s678_s25 = sshra.s32 %s160_s17, 4  ;;  %s685_s30 = scalar_lea.hbm %s981_s0, 64  ;;  %s679_s25 = int_to_ptr.hbm [resolvable:$true] %s678_s25 }
  0x1b   : > { %s680_s27 = scalar_lea.hbm %s679_s25, 32  ;;  %p682_p10 = pneg %p885_p9 }
  0x1c   : > { %p681_p2 = scmp.ne.s32.totalorder %s679_s25, %s680_s27  ;;  %p686_p0 = scmp.lt.s32.totalorder %s679_s25, %s981_s0 }
  0x1d   : > { %p687_p3 = scmp.lt.s32.totalorder %s685_s30, %s680_s27 }
  0x1e   : > { %p683_p12 = pnand %p682_p10, %p681_p2 }
  0x1f   : > { %p688_p5 = por %p687_p3, %p686_p0 }
  0x20   : > { %p684_p13 = pneg %p683_p12 }
  0x22   : > { %p689_p11 = pnand %p688_p5, %p684_p13 }
  0x24   : > { %692 = shalt.err (!%p689_p11)
}
  0x25   : > { %s783_s6 = smov 128   ;;  %s784_s9 = smov 8  }
  0x26   : > { %583 = dma.hbm_to_vmem [thread:$0]  (!%p885_p9), %s160_s17, 512, %s162_s21, %s150_s24, %s783_s6, %s783_s6, %s784_s9  }
  0x27   : > { %173 = sbr.rel (%p850_p8) target bundleno = 256 (0x100), region = 32  ;;  %s902_s10 = sand.u32 (!%p850_p8), 1, %s770_s13  }
  0x28   : > { %s506_s11 = sshll.u32 (!%p850_p8), %s902_s10, 5  ;;  %s176_s20 = scalar_lea.sflag (!%p850_p8), [#allocation3], %s902_s10 }
  0x29   : > { %s179_s25 = scalar_lea.vmem (!%p850_p8), [#allocation2], %s506_s11 }
  0x2c   : > { %753 = dma.done.wait (%p837_p4), %s176_s20, 512  }
  0x2d   : > { %755 = vsyncadd (%p837_p4), %s176_s20, 4294966784 }
  0x2e   : > { %757 = dma.done.wait (%p41_p1), [#allocation6], 1024  }
  0x2f   : > { %759 = vsyncadd (%p41_p1), [#allocation6], 4294966272  ;;  %v558_v0 = vld [vmem:[#allocation5 + $0x38] sm:$0xff]  ;;  %v557_v1 = vld [vmem:[#allocation5 + $0x30] sm:$0xff]  ;;  %s559_s17 = sshll.u32 %s828_s16, 5  ;;  %s207_s21 = scalar_lea.vmem [#allocation7], %s506_s11 }
  0x30   : > { %284 = vmatpush.bf16.msra.mxu0 %v558_v0  ;;  %560 = vmatpush.bf16.msra.mxu1 %v558_v0  ;;  %v556_v2 = vld [vmem:[#allocation5 + $0x28] sm:$0xff]  ;;  %v555_v3 = vld [vmem:[#allocation5 + $0x20] sm:$0xff]  ;;  %v554_v4 = vld [vmem:[#allocation5 + $0x18] sm:$0xff]  ;;  %s411_s27 = scalar_lea.hbm %s984_s3, %s559_s17  ;;  %s412_s16 = sshll.u32 %s207_s21, 4  ;;  %s413_s16 = int_to_ptr.vmem [resolvable:$true] %s412_s16 }
  0x31   : > { %v553_v5 = vld [vmem:[#allocation5 + $0x10] sm:$0xff]  ;;  %v552_v6 = vld [vmem:[#allocation5 + $0x8] sm:$0xff]  ;;  %v551_v7 = vld [vmem:[#allocation5] sm:$0xff]  ;;  %s414_s28 = sshll.u32 %s411_s27, 4  ;;  %s400_s29 = scalar_lea.sflag [#allocation4], %s902_s10  ;;  %s415_s28 = int_to_ptr.hbm [resolvable:$true] %s414_s28 }
  0x32   : > { %v916_v8 = vld [vmem:[%s179_s25] sm:$0xff]  ;;  %v918_v9 = vld [vmem:[%s179_s25 + $0x8] sm:$0xff]  ;;  %v920_v10 = vld [vmem:[%s179_s25 + $0x10] sm:$0xff]  ;;  %s722_s30 = sshra.s32 %s415_s28, 4  ;;  %s728_s9 = scalar_lea.hbm %s984_s3, 64  ;;  %s723_s30 = int_to_ptr.hbm [resolvable:$true] %s722_s30 }
  0x33   : > { %v922_v11 = vld [vmem:[%s179_s25 + $0x18] sm:$0xff]  ;;  %v214_v12 = vpack.c.bf16 %v918_v9, %v916_v8  ;;  %v631_v14 = vld [vmem:[%s983_s2] ss:$0 sm:$0xff]  ;;  %s724_s7 = scalar_lea.hbm %s723_s30, 32  ;;  %p729_p11 = scmp.lt.s32.totalorder %s723_s30, %s984_s3 }
  0x34   : > { %285 = vmatpush.bf16.msra.mxu0 %v557_v1  ;;  %561 = vmatpush.bf16.msra.mxu1 %v557_v1  ;;  %v215_v13 = vpack.c.bf16 %v922_v11, %v920_v10  ;;  %p725_p1 = scmp.ne.s32.totalorder %s723_s30, %s724_s7  ;;  %p730_p9 = scmp.lt.s32.totalorder %s728_s9, %s724_s7 }
  0x36   : > { %p726_p4 = pnand %p725_p1, %p874_p7  ;;  %p731_p2 = por %p730_p9, %p729_p11 }
  0x38   : > { %286 = vmatpush.bf16.msra.mxu0 %v556_v2  ;;  %562 = vmatpush.bf16.msra.mxu1 %v556_v2  ;;  %p727_p8 = pneg %p726_p4 }
  0x3a   : > { %p732_p10 = pnand %p731_p2, %p727_p8 }
  0x3c   : > { %287 = vmatpush.bf16.msra.mxu0 %v555_v3  ;;  %563 = vmatpush.bf16.msra.mxu1 %v555_v3 }
  0x40   : > { %288 = vmatpush.bf16.msra.mxu0 %v554_v4  ;;  %564 = vmatpush.bf16.msra.mxu1 %v554_v4 }
  0x44   : > { %289 = vmatpush.bf16.msra.mxu0 %v553_v5  ;;  %565 = vmatpush.bf16.msra.mxu1 %v553_v5 }
  0x48   : > { %290 = vmatpush.bf16.msra.mxu0 %v552_v6  ;;  %566 = vmatpush.bf16.msra.mxu1 %v552_v6 }
  0x4c   : > { %291 = vmatpush.bf16.msra.mxu0 %v551_v7  ;;  %567 = vmatpush.bf16.msra.mxu1 %v551_v7 }
  0x4f   : > { %292 = vmatmul.bf16.vlgmr.msra.gmra.mxu0 %v214_v12  ;;  %297 = vmatmul.bf16.vlgmr.msra.gmra.mxu1 %v215_v13 }
  0xcc   : > { %v293_v15 = vpop.f32.mrf.mxu0  ;;  %v298_v16 = vpop.f32.mrf.mxu1 }
  0xcd   : > { %v294_v17 = vadd.f32 %v631_v14, %v293_v15  ;;  %v299_v18 = vadd.f32 %v631_v14, %v298_v16 }
  0xcf   : > { %v541_v19 = vmul.f32 -1.442695, %v294_v17  ;;  %v543_v20 = vmul.f32 -1.442695, %v299_v18 }
  0xd1   : > { %632 = vpow2.f32 %v541_v19 }
  0xd2   : > { %634 = vpow2.f32 %v543_v20 }
  0xd4   : > { %v295_v21 = vpop.f32.mrf.mxu0  ;;  %v300_v22 = vpop.f32.mrf.mxu1 }
  0xd5   : > { %v296_v23 = vadd.f32 %v631_v14, %v295_v21  ;;  %v301_v24 = vadd.f32 %v631_v14, %v300_v22 }
  0xd7   : > { %v633_v25 = vpop.eup %632  ;;  %v542_v26 = vmul.f32 -1.442695, %v296_v23  ;;  %v544_v29 = vmul.f32 -1.442695, %v301_v24 }
  0xd8   : > { %v635_v27 = vpop.eup %634  ;;  %v315_v28 = vadd.f32 1.0, %v633_v25 }
  0xd9   : > { %v317_v30 = vadd.f32 1.0, %v635_v27  ;;  %636 = vpow2.f32 %v542_v26 }
  0xda   : > { %638 = vrcp.f32 %v315_v28  ;;  %v328_v40 = vand.u32 2147483647, %v315_v28  ;;  %v330_v41 = vand.u32 2147483648, %v315_v28  ;;  %vm324_vm2 = vweird.f32 %v315_v28 }
  0xdb   : > { %640 = vrcp.f32 %v317_v30  ;;  %v360_v44 = vand.u32 2147483648, %v317_v30  ;;  %v358_v46 = vand.u32 2147483647, %v317_v30  ;;  %vm354_vm4 = vweird.f32 %v317_v30 }
  0xdc   : > { %642 = vpow2.f32 %v544_v29  ;;  %v331_v49 = vor.u32 1.1754944e-38, %v330_v41  ;;  %vm329_vm5 = vcmp.eq.f32.partialorder %v328_v40, 8.507059e+37 }
  0xdd   : > { %v361_v52 = vor.u32 1.1754944e-38, %v360_v44  ;;  %vm359_vm7 = vcmp.eq.f32.partialorder %v358_v46, 8.507059e+37 }
  0xdf   : > { %v637_v31 = vpop.eup %636 }
  0xe0   : > { %v639_v32 = vpop.eup %638  ;;  %v316_v33 = vadd.f32 1.0, %v637_v31 }
  0xe1   : > { %v641_v34 = vpop.eup %640  ;;  %v320_v35 = vmul.f32 %v639_v32, %v315_v28  ;;  %vm325_vm0 = vweird.f32 %v639_v32 }
  0xe2   : > { %v643_v36 = vpop.eup %642  ;;  %v350_v37 = vmul.f32 %v641_v34, %v317_v30  ;;  %644 = vrcp.f32 %v316_v33  ;;  %vm355_vm1 = vweird.f32 %v641_v34  ;;  %vm326_vm3 = vmor %vm324_vm2, %vm325_vm0  ;;  %v345_v60 = vand.u32 2147483648, %v316_v33 }
  0xe3   : > { %v321_v38 = vsub.f32 1.0, %v320_v35  ;;  %v931_v39 = vadd.f32 1.0, %v643_v36  ;;  %vm356_vm6 = vmor %vm354_vm4, %vm355_vm1  ;;  %v343_v62 = vand.u32 2147483647, %v316_v33  ;;  %vm339_vm9 = vweird.f32 %v316_v33 }
  0xe4   : > { %v351_v42 = vsub.f32 1.0, %v350_v37  ;;  %v346_v12 = vor.u32 1.1754944e-38, %v345_v60 }
  0xe5   : > { %v322_v43 = vmul.f32 %v639_v32, %v321_v38  ;;  %646 = vrcp.f32 %v931_v39  ;;  %v375_v13 = vand.u32 2147483648, %v931_v39  ;;  %vm344_vm12 = vcmp.eq.f32.partialorder %v343_v62, 8.507059e+37 }
  0xe6   : > { %v352_v45 = vmul.f32 %v641_v34, %v351_v42  ;;  %vm369_vm13 = vweird.f32 %v931_v39 }
  0xe7   : > { %v323_v47 = vadd.f32 %v639_v32, %v322_v43  ;;  %v376_v19 = vor.u32 1.1754944e-38, %v375_v13 }
  0xe8   : > { %v645_v48 = vpop.eup %644  ;;  %v353_v50 = vadd.f32 %v641_v34, %v352_v45 }
  0xe9   : > { %v327_v51 = vsel %vm326_vm3, %v639_v32, %v323_v47  ;;  %v335_v53 = vmul.f32 %v645_v48, %v316_v33  ;;  %vm340_vm8 = vweird.f32 %v645_v48 }
  0xea   : > { %v332_v54 = vsel %vm329_vm5, %v331_v49, %v327_v51  ;;  %v357_v55 = vsel %vm356_vm6, %v641_v34, %v353_v50  ;;  %vm341_vm10 = vmor %vm339_vm9, %vm340_vm8 }
  0xeb   : > { %v647_v56 = vpop.eup %646  ;;  %v383_v57 = vsub.f32 1.0, %v332_v54  ;;  %v362_v58 = vsel %vm359_vm7, %v361_v52, %v357_v55  ;;  %v336_v59 = vsub.f32 1.0, %v335_v53  ;;  %v379_v0 = vmul.f32 %v332_v54, %v916_v8 }
  0xec   : > { %v385_v61 = vsub.f32 1.0, %v362_v58  ;;  %v365_v63 = vmul.f32 %v647_v56, %v931_v39  ;;  %v381_v3 = vmul.f32 %v362_v58, %v920_v10  ;;  %vm370_vm11 = vweird.f32 %v647_v56 }
  0xed   : > { %v387_v1 = vmul.f32 %v383_v57, %v916_v8  ;;  %v337_v2 = vmul.f32 %v645_v48, %v336_v59  ;;  %v373_v8 = vand.u32 2147483647, %v931_v39  ;;  %vm371_vm14 = vmor %vm369_vm13, %vm370_vm11 }
  0xee   : > { %v389_v4 = vmul.f32 %v385_v61, %v920_v10  ;;  %v366_v5 = vsub.f32 1.0, %v365_v63 }
  0xef   : > { %v391_v6 = vadd.f32 %v387_v1, %v379_v0  ;;  %v338_v7 = vadd.f32 %v645_v48, %v337_v2  ;;  %vm374_vm15 = vcmp.eq.f32.partialorder %v373_v8, 8.507059e+37 }
  0xf0   : > { %v393_v14 = vadd.f32 %v389_v4, %v381_v3  ;;  %v367_v15 = vmul.f32 %v647_v56, %v366_v5 }
  0xf1   : > { %v342_v16 = vsel %vm341_vm10, %v645_v48, %v338_v7  ;;  %395 = vst [vmem:[%s207_s21] sm:$0xff] %v391_v6 }
  0xf2   : > { %v347_v10 = vsel %vm344_vm12, %v346_v12, %v342_v16  ;;  %v368_v17 = vadd.f32 %v647_v56, %v367_v15  ;;  %397 = vst [vmem:[%s207_s21 + $0x10] sm:$0xff] %v393_v14 }
  0xf3   : > { %v384_v18 = vsub.f32 1.0, %v347_v10  ;;  %v380_v21 = vmul.f32 %v347_v10, %v918_v9 }
  0xf4   : > { %v372_v20 = vsel %vm371_vm14, %v647_v56, %v368_v17 }
  0xf5   : > { %v388_v22 = vmul.f32 %v384_v18, %v918_v9  ;;  %v377_v23 = vsel %vm374_vm15, %v376_v19, %v372_v20 }
  0xf6   : > { %v386_v24 = vsub.f32 1.0, %v377_v23  ;;  %v382_v26 = vmul.f32 %v377_v23, %v922_v11 }
  0xf7   : > { %v392_v25 = vadd.f32 %v388_v22, %v380_v21 }
  0xf8   : > { %v390_v27 = vmul.f32 %v386_v24, %v922_v11 }
  0xf9   : > { %396 = vst [vmem:[%s207_s21 + $0x8] sm:$0xff] %v392_v25 }
  0xfa   : > { %v394_v28 = vadd.f32 %v390_v27, %v382_v26 }
  0xfc   : > { %398 = vst [vmem:[%s207_s21 + $0x18] sm:$0xff] %v394_v28 }
  0xfd   : > { %735 = shalt.err (!%p732_p10)
}
  0xfe   : > { %s785_s10 = smov 128   ;;  %s786_s25 = smov 8  }
  0xff   : > { %574 = dma.vmem_to_hbm [thread:$0]  (%p874_p7), %s413_s16, 512, %s415_s28, %s400_s29, %s785_s10, %s785_s10, %s786_s25  }
 0x100 PF: > { %s429_s18 = sand.u32 1, %s766_s12   ;;  %p990_p12 = scmp.ge.s32.totalorder %s778_s15, 2 }
 0x101   : > { %s430_s23 = scalar_lea.sflag [#allocation4], %s429_s18 }
 0x102   : > { %p585_p13 = pnand %p990_p12, %p842_p6 }
 0x104   : > { %p586_p0 = pneg %p585_p13 }
 0x106   : > { %761 = dma.done.wait (%p586_p0), %s430_s23, 512  }
 0x107   : > { %763 = vsyncadd (%p586_p0), %s430_s23, 4294966784  ;;  %p17_p3 = scmp.ge.s32.totalorder %s860_s26, 4   ;;  %s991_s12 = smov %s770_s13 }
 0x108   : > { %s992_s13 = smov %s774_s14  ;;  %s993_s14 = smov %s870_s4 }
 0x109   : > { %s994_s15 = smov %s860_s26  ;;  %19 = sbr.rel (!%p17_p3) target bundleno = 6 (0x6), region = 81 }
 0x10e   :  { %436 = vsyncpa [#allocation3], 1 }
 0x10f   :  { %438 = vsyncpa [#allocation3 + $0x1], 1 }
 0x110   :  { %439 = vsyncpa [#allocation6], 1 }
 0x111   :  { %440 = vsyncpa [#allocation4], 1 }
 0x112   :  { %442 = vsyncpa [#allocation4 + $0x1], 1 }

</bundles_post_ra>
